<compile_context>
chip_gen: v5e
topology: v5e:2x2
jax: 0.10.0
libtpu: 0.0.40
codegen_flags: <defaults>
</compile_context>

<pallas_src>
import jax
import jax.numpy as jnp
from jax.experimental import pallas as pl
from jax.experimental.pallas import tpu as pltpu


def _copy_kernel(x_ref, o_ref):
    # Lane-dense identity copy of one (block_rows, H*D) tile.
    o_ref[...] = x_ref[...]


def _pick_block_rows(rows, lane_width, itemsize, max_block_bytes=4 << 20):
    """Largest multiple-of-8 divisor of `rows` whose block fits the byte cap,
    preferring an even grid length (v7x megacore split)."""
    cands = [d for d in range(8, rows + 1, 8)
             if rows % d == 0 and d * lane_width * itemsize <= max_block_bytes]
    if not cands:
        # Tiny / awkward row count: single full block (bounded by the caller's
        # small shapes; never hit for this module's 384 rows).
        return rows
    even_grid = [d for d in cands if (rows // d) % 2 == 0]
    return max(even_grid) if even_grid else max(cands)


def view_as_heads(x, num_heads, head_dim):
    """Exact torch .view semantics: (B, S, H*D) -> (B, S, H, D).

    Pure metadata reshape — no pallas_call, no HBM traffic (reviewer's top
    recommendation).
    """
    B, S, HD = x.shape
    assert HD == num_heads * head_dim
    return jnp.reshape(x, (B, S, num_heads, head_dim))


def view_as_heads_pallas_stub(x, num_heads, head_dim):
    """Optional Pallas fusion point with the same semantics.

    TODO(synk): in a real model, fold this head split into the consumer
    kernel's BlockSpec / pl.ds(h*head_dim, head_dim) indexing instead of a
    standalone copy.
    """
    B, S, HD = x.shape
    assert HD == num_heads * head_dim

    rows = B * S
    x2d = jnp.reshape(x, (rows, HD))  # metadata-only fold of batch into rows

    block_rows = _pick_block_rows(rows, HD, jnp.dtype(x.dtype).itemsize)
    grid = (rows // block_rows,) if rows % block_rows == 0 else (1,)
    if rows % block_rows != 0:
        block_rows = rows

    out2d = pl.pallas_call(
        _copy_kernel,
        out_shape=jax.ShapeDtypeStruct((rows, HD), x.dtype),
        grid=grid,
        in_specs=[pl.BlockSpec((block_rows, HD), lambda i: (i, 0))],
        out_specs=pl.BlockSpec((block_rows, HD), lambda i: (i, 0)),
        input_output_aliases={0: 0},  # output reuses input HBM buffer
        compiler_params=pltpu.CompilerParams(
            dimension_semantics=("parallel",)),
    )(x2d)

    # The actual .view semantics: metadata reshape, no extra HBM traffic.
    return jnp.reshape(out2d, (B, S, num_heads, head_dim))


if __name__ == "__main__":
    key = jax.random.PRNGKey(0)
    # Shapes implied by the module: x198 = (1, 384, 768), x201 = (1, 384, 12, 64)
    B, S, H, D = 1, 384, 12, 64
    x198 = jax.random.normal(key, (B, S, H * D), dtype=jnp.float32)
    x201 = (B, S, H, D)

    # Primary path: pure metadata reshape (reviewer's recommendation).
    out = view_as_heads(x198, H, D)
    out = jax.block_until_ready(out)

    # Run the Pallas fusion-point stub once to validate the kernel itself.
    out_stub = view_as_heads_pallas_stub(x198, H, D)
    out_stub = jax.block_until_ready(out_stub)

    # Reference check against plain reshape (exact PyTorch .view semantics).
    ref = jnp.reshape(x198, x201)
    assert out.shape == x201 and out.dtype == x198.dtype
    assert out_stub.shape == x201 and out_stub.dtype == x198.dtype
    assert bool(jnp.array_equal(out, ref))
    assert bool(jnp.array_equal(out_stub, ref))

    print("KERNEL_OK")
</pallas_src>

<mosaic_0001>
module attributes {stable_mosaic.version = 11 : i64} {
  func.func @_copy_kernel(%arg0: i32, %arg1: memref<192x768xf32, #tpu.memory_space<vmem>>, %arg2: memref<192x768xf32, #tpu.memory_space<vmem>>) attributes {dimension_semantics = [#tpu.dimension_semantics<parallel>], iteration_bounds = array<i64: 2>, scalar_prefetch = 0 : i64, scratch_operands = 0 : i64, tpu.core_type = #tpu.core_type<tc>, window_params = [{transform_indices = @transform_0, window_bounds = array<i64: 192, 768>}, {transform_indices = @transform_1, window_bounds = array<i64: 192, 768>}]} {
    %c0 = arith.constant 0 : index
    %c0_0 = arith.constant 0 : index
    %0 = vector.load %arg1[%c0, %c0_0] : memref<192x768xf32, #tpu.memory_space<vmem>>, vector<192x768xf32>
    %c0_1 = arith.constant 0 : index
    %c0_2 = arith.constant 0 : index
    %1 = vector.load %arg2[%c0_1, %c0_2] : memref<192x768xf32, #tpu.memory_space<vmem>>, vector<192x768xf32>
    tpu.vector_store %arg2[%c0_1, %c0_2], %0 {strides = array<i32>} : memref<192x768xf32, #tpu.memory_space<vmem>>, vector<192x768xf32>,
    return
  }
  func.func @transform_0(%arg0: i32) -> (i32, i32) {
    %c0_i32 = arith.constant 0 : i32
    %c0_i32_0 = arith.constant 0 : i32
    return %arg0, %c0_i32 : i32, i32
  }
  func.func @transform_1(%arg0: i32) -> (i32, i32) {
    %c0_i32 = arith.constant 0 : i32
    %c0_i32_0 = arith.constant 0 : i32
    return %arg0, %c0_i32 : i32, i32
  }
}

</mosaic_0001>

<bundles_post_ra>
// kernel: tpu_custom_call.1
= control target key start
LH: loop header
LB: loop body
LE: loop exit
PB: predicated region body
PF: predicated region fallthrough
CT: control target
= control target key end

     0   :  { %6 = vsyncpa [#allocation3], 0  ;;  %s1106_s0 = inlined_call_operand.hbm [shape: f32[384,768], index: 0, kind: input, shape index: {}, may-alias: {0,1}]   ;;  %s1107_s1 = inlined_call_operand.hbm [shape: f32[384,768], index: 1, kind: output, shape index: {}, may-alias: {0,1}]  }
   0x1   :  { %8 = vsyncpa [#allocation3 + $0x1], 0 }
   0x2   :  { %9 = vsyncpa [#allocation4], 0 }
   0x3   :  { %11 = vsyncpa [#allocation4 + $0x1], 0  ;;  %s694_s6 = smov 0   ;;  %s696_s7 = smov 0  }
   0x4   :  { %s698_s8 = smov 0   ;;  %s700_s9 = smov 0  }
   0x5 LB: > { %s715_s10 = sadd.s32 4294967295, %s678_s9   ;;  %s518_s11 = sadd.s32 4294967294, %s678_s9   ;;  %s678_s9 = sphi %s700_s9, %s1115_s9   ;;  %s674_s8 = sphi %s698_s8, %s1114_s8   ;;  %s670_s7 = sphi %s696_s7, %s1113_s7   ;;  %s666_s6 = sphi %s694_s6, %s1112_s6  }
   0x6   : > { %s719_s12 = sadd.s32 1, %s678_s9   ;;  %s24_s13 = sadd.s32 1, %s674_s8 }
   0x7   : > { %s21_s14 = ssub.s32 %s678_s9, %s719_s12  ;;  %p31_p0 = scmp.ne.s32.totalorder %s674_s8, %s670_s7 }
   0x8   : > { %p22_p1 = scmp.eq.s32.totalorder %s21_s14, 0  ;;  %p32_p2 = scmp.eq.s32.totalorder %s678_s9, 0 }
   0x9   : > { %p37_p3 = scmp.ne.s32.totalorder %s670_s7, %s666_s6  ;;  %p38_p4 = scmp.eq.s32.totalorder %s715_s10, 0 }
   0xa   : > { %s731_s15 = scalar_select %p22_p1, %s674_s8, %s24_s13  }
   0xb   : > { %p33_p5 = por %p32_p2, %p31_p0  ;;  %p733_p6 = por %p38_p4, %p37_p3 }
   0xc   : > { %p61_p7 = scmp.eq.s32.totalorder %s715_s10, 1  ;;  %p67_p8 = scmp.eq.s32.totalorder %s518_s11, 1 }
   0xd   : > { %p520_p9 = scmp.ge.s32.totalorder %s678_s9, 2  ;;  %p542_p10 = scmp.lt.s32.totalorder %s678_s9, 2 }
   0xe   : > { %p740_p11 = por %p61_p7, %p31_p0  ;;  %p744_p12 = por %p67_p8, %p37_p3 }
   0xf   : > { %s87_s19 = sand.u32 1, %s674_s8   ;;  %s543_s21 = smul.u32 1152, %s678_s9 }
  0x10   : > { %s526_s20 = smul.u32 1152, %s87_s19  ;;  %p750_p13 = pnand %p542_p10, %p33_p5 }
  0x11   : > { %s97_s25 = scalar_lea.hbm %s1106_s0, %s543_s21  ;;  %p522_p0 = scmp.ge.s32.totalorder %s678_s9, 1 }
  0x12   : > { %s91_s26 = scalar_lea.vmem [#allocation2], %s526_s20  ;;  %s98_s28 = sshll.u32 %s97_s25, 4  ;;  %s99_s28 = int_to_ptr.hbm [resolvable:$true] %s98_s28 }
  0x13   : > { %s100_s27 = sshll.u32 %s91_s26, 4  ;;  %s88_s29 = scalar_lea.sflag [#allocation3], %s87_s19  ;;  %s101_s27 = int_to_ptr.vmem [resolvable:$true] %s100_s27 }
  0x14   : > { %s582_s30 = sshra.s32 %s99_s28, 4  ;;  %p586_p2 = pneg %p750_p13  ;;  %s583_s30 = int_to_ptr.hbm [resolvable:$true] %s582_s30 }
  0x15   : > { %s584_s2 = scalar_lea.hbm %s583_s30, 1152  ;;  %s589_s5 = scalar_lea.hbm %s1106_s0, 2304 }
  0x16   : > { %p585_p1 = scmp.ne.s32.totalorder %s583_s30, %s584_s2  ;;  %p590_p5 = scmp.lt.s32.totalorder %s583_s30, %s1106_s0 }
  0x17   : > { %p591_p7 = scmp.lt.s32.totalorder %s589_s5, %s584_s2 }
  0x18   : > { %p587_p3 = pnand %p586_p2, %p585_p1 }
  0x19   : > { %p592_p8 = por %p591_p7, %p590_p5 }
  0x1a   : > { %p588_p4 = pneg %p587_p3 }
  0x1c   : > { %p593_p10 = pnand %p592_p8, %p588_p4 }
  0x1e   : > { %596 = shalt.err (!%p593_p10)
}
  0x1f   : > { %s680_s14 = smov 768   ;;  %s681_s19 = smov 48  }
  0x20   : > { %537 = dma.hbm_to_vmem [thread:$0]  (!%p750_p13), %s99_s28, 18432, %s101_s27, %s88_s29, %s680_s14, %s680_s14, %s681_s19  }
  0x21   : > { %p108_p1 = scmp.lt.s32.totalorder %s678_s9, 3 }
  0x23   : > { %p109_p2 = pnand %p522_p0, %p108_p1 }
  0x24   : > { %s772_s20 = sand.u32 (!%p109_p2), 1, %s670_s7  }
  0x25   : > { %112 = sbr.rel (%p109_p2) target bundleno = 191 (0xbf), region = 24  ;;  %s115_s23 = scalar_lea.sflag (!%p109_p2), [#allocation3], %s772_s20 }
  0x26   : > { %s528_s21 = smul.u32 (!%p109_p2), 1152, %s772_s20 }
  0x28   : > { %s776_s24 = scalar_lea.vmem (!%p109_p2), [#allocation2], %s528_s21 }
  0x2a   : > { %657 = dma.done.wait (%p733_p6), %s115_s23, 18432  }
  0x2b   : > { %659 = vsyncadd (%p733_p6), %s115_s23, 4294948864  ;;  %v140_v0 = vld [vmem:[%s776_s24] sm:$0xff]  ;;  %v141_v1 = vld [vmem:[%s776_s24 + $0x8] sm:$0xff]  ;;  %s785_s22 = scalar_lea.vmem [#allocation5], %s528_s21  ;;  %s544_s16 = smul.u32 1152, %s715_s10 }
  0x2c   : > { %v142_v2 = vld [vmem:[%s776_s24 + $0x10] sm:$0xff]  ;;  %284 = vst [vmem:[%s785_s22] sm:$0xff] %v140_v0  ;;  %v143_v3 = vld [vmem:[%s776_s24 + $0x18] sm:$0xff]  ;;  %v144_v4 = vld [vmem:[%s776_s24 + $0x20] sm:$0xff]  ;;  %s442_s10 = sshll.u32 %s785_s22, 4  ;;  %s429_s29 = scalar_lea.sflag [#allocation4], %s772_s20  ;;  %s443_s10 = int_to_ptr.vmem [resolvable:$true] %s442_s10 }
  0x2d   : > { %285 = vst [vmem:[%s785_s22 + $0x8] sm:$0xff] %v141_v1  ;;  %v145_v5 = vld [vmem:[%s776_s24 + $0x28] sm:$0xff]  ;;  %v146_v6 = vld [vmem:[%s776_s24 + $0x30] sm:$0xff]  ;;  %v147_v7 = vld [vmem:[%s776_s24 + $0x38] sm:$0xff]  ;;  %s441_s27 = scalar_lea.hbm %s1107_s1, %s544_s16  ;;  %s632_s5 = scalar_lea.hbm %s1107_s1, 2304 }
  0x2e   : > { %286 = vst [vmem:[%s785_s22 + $0x10] sm:$0xff] %v142_v2  ;;  %v148_v8 = vld [vmem:[%s776_s24 + $0x40] sm:$0xff]  ;;  %v149_v9 = vld [vmem:[%s776_s24 + $0x48] sm:$0xff]  ;;  %v150_v10 = vld [vmem:[%s776_s24 + $0x50] sm:$0xff]  ;;  %s444_s28 = sshll.u32 %s441_s27, 4  ;;  %s445_s28 = int_to_ptr.hbm [resolvable:$true] %s444_s28 }
  0x2f   : > { %287 = vst [vmem:[%s785_s22 + $0x18] sm:$0xff] %v143_v3  ;;  %v151_v11 = vld [vmem:[%s776_s24 + $0x58] sm:$0xff]  ;;  %v152_v12 = vld [vmem:[%s776_s24 + $0x60] sm:$0xff]  ;;  %v153_v13 = vld [vmem:[%s776_s24 + $0x68] sm:$0xff]  ;;  %s626_s30 = sshra.s32 %s445_s28, 4  ;;  %s627_s30 = int_to_ptr.hbm [resolvable:$true] %s626_s30 }
  0x30   : > { %288 = vst [vmem:[%s785_s22 + $0x20] sm:$0xff] %v144_v4  ;;  %v154_v14 = vld [vmem:[%s776_s24 + $0x70] sm:$0xff]  ;;  %v155_v15 = vld [vmem:[%s776_s24 + $0x78] sm:$0xff]  ;;  %v156_v16 = vld [vmem:[%s776_s24 + $0x80] sm:$0xff]  ;;  %s628_s2 = scalar_lea.hbm %s627_s30, 1152  ;;  %p633_p3 = scmp.lt.s32.totalorder %s627_s30, %s1107_s1 }
  0x31   : > { %289 = vst [vmem:[%s785_s22 + $0x28] sm:$0xff] %v145_v5  ;;  %v157_v17 = vld [vmem:[%s776_s24 + $0x88] sm:$0xff]  ;;  %v158_v18 = vld [vmem:[%s776_s24 + $0x90] sm:$0xff]  ;;  %v159_v19 = vld [vmem:[%s776_s24 + $0x98] sm:$0xff]  ;;  %p629_p6 = scmp.ne.s32.totalorder %s627_s30, %s628_s2  ;;  %p634_p4 = scmp.lt.s32.totalorder %s632_s5, %s628_s2 }
  0x32   : > { %290 = vst [vmem:[%s785_s22 + $0x30] sm:$0xff] %v146_v6  ;;  %v160_v20 = vld [vmem:[%s776_s24 + $0xa0] sm:$0xff]  ;;  %v161_v21 = vld [vmem:[%s776_s24 + $0xa8] sm:$0xff]  ;;  %v162_v22 = vld [vmem:[%s776_s24 + $0xb0] sm:$0xff] }
  0x33   : > { %291 = vst [vmem:[%s785_s22 + $0x38] sm:$0xff] %v147_v7  ;;  %v163_v23 = vld [vmem:[%s776_s24 + $0xb8] sm:$0xff]  ;;  %v164_v24 = vld [vmem:[%s776_s24 + $0xc0] sm:$0xff]  ;;  %v165_v25 = vld [vmem:[%s776_s24 + $0xc8] sm:$0xff]  ;;  %p630_p13 = pnand %p629_p6, %p740_p11  ;;  %p635_p5 = por %p634_p4, %p633_p3 }
  0x34   : > { %292 = vst [vmem:[%s785_s22 + $0x40] sm:$0xff] %v148_v8  ;;  %v166_v26 = vld [vmem:[%s776_s24 + $0xd0] sm:$0xff]  ;;  %v167_v27 = vld [vmem:[%s776_s24 + $0xd8] sm:$0xff]  ;;  %v168_v28 = vld [vmem:[%s776_s24 + $0xe0] sm:$0xff] }
  0x35   : > { %293 = vst [vmem:[%s785_s22 + $0x48] sm:$0xff] %v149_v9  ;;  %v169_v29 = vld [vmem:[%s776_s24 + $0xe8] sm:$0xff]  ;;  %v170_v30 = vld [vmem:[%s776_s24 + $0xf0] sm:$0xff]  ;;  %v171_v31 = vld [vmem:[%s776_s24 + $0xf8] sm:$0xff]  ;;  %p631_p0 = pneg %p630_p13 }
  0x36   : > { %294 = vst [vmem:[%s785_s22 + $0x50] sm:$0xff] %v150_v10  ;;  %v172_v32 = vld [vmem:[%s776_s24 + $0x100] sm:$0xff]  ;;  %v173_v33 = vld [vmem:[%s776_s24 + $0x108] sm:$0xff]  ;;  %v174_v34 = vld [vmem:[%s776_s24 + $0x110] sm:$0xff] }
  0x37   : > { %295 = vst [vmem:[%s785_s22 + $0x58] sm:$0xff] %v151_v11  ;;  %v175_v35 = vld [vmem:[%s776_s24 + $0x118] sm:$0xff]  ;;  %v176_v36 = vld [vmem:[%s776_s24 + $0x120] sm:$0xff]  ;;  %v177_v37 = vld [vmem:[%s776_s24 + $0x128] sm:$0xff]  ;;  %p636_p7 = pnand %p635_p5, %p631_p0 }
  0x38   : > { %296 = vst [vmem:[%s785_s22 + $0x60] sm:$0xff] %v152_v12  ;;  %v178_v38 = vld [vmem:[%s776_s24 + $0x130] sm:$0xff]  ;;  %v179_v39 = vld [vmem:[%s776_s24 + $0x138] sm:$0xff]  ;;  %v180_v40 = vld [vmem:[%s776_s24 + $0x140] sm:$0xff] }
  0x39   : > { %297 = vst [vmem:[%s785_s22 + $0x68] sm:$0xff] %v153_v13  ;;  %v181_v41 = vld [vmem:[%s776_s24 + $0x148] sm:$0xff]  ;;  %v182_v42 = vld [vmem:[%s776_s24 + $0x150] sm:$0xff]  ;;  %v183_v43 = vld [vmem:[%s776_s24 + $0x158] sm:$0xff] }
  0x3a   : > { %298 = vst [vmem:[%s785_s22 + $0x70] sm:$0xff] %v154_v14  ;;  %v184_v44 = vld [vmem:[%s776_s24 + $0x160] sm:$0xff]  ;;  %v185_v45 = vld [vmem:[%s776_s24 + $0x168] sm:$0xff]  ;;  %v186_v46 = vld [vmem:[%s776_s24 + $0x170] sm:$0xff] }
  0x3b   : > { %299 = vst [vmem:[%s785_s22 + $0x78] sm:$0xff] %v155_v15  ;;  %v187_v47 = vld [vmem:[%s776_s24 + $0x178] sm:$0xff]  ;;  %v188_v48 = vld [vmem:[%s776_s24 + $0x180] sm:$0xff]  ;;  %v189_v49 = vld [vmem:[%s776_s24 + $0x188] sm:$0xff] }
  0x3c   : > { %300 = vst [vmem:[%s785_s22 + $0x80] sm:$0xff] %v156_v16  ;;  %v190_v50 = vld [vmem:[%s776_s24 + $0x190] sm:$0xff]  ;;  %v191_v51 = vld [vmem:[%s776_s24 + $0x198] sm:$0xff]  ;;  %v192_v52 = vld [vmem:[%s776_s24 + $0x1a0] sm:$0xff] }
  0x3d   : > { %301 = vst [vmem:[%s785_s22 + $0x88] sm:$0xff] %v157_v17  ;;  %v193_v53 = vld [vmem:[%s776_s24 + $0x1a8] sm:$0xff]  ;;  %v194_v54 = vld [vmem:[%s776_s24 + $0x1b0] sm:$0xff]  ;;  %v195_v55 = vld [vmem:[%s776_s24 + $0x1b8] sm:$0xff] }
  0x3e   : > { %302 = vst [vmem:[%s785_s22 + $0x90] sm:$0xff] %v158_v18  ;;  %v196_v56 = vld [vmem:[%s776_s24 + $0x1c0] sm:$0xff]  ;;  %v197_v57 = vld [vmem:[%s776_s24 + $0x1c8] sm:$0xff]  ;;  %v198_v58 = vld [vmem:[%s776_s24 + $0x1d0] sm:$0xff] }
  0x3f   : > { %303 = vst [vmem:[%s785_s22 + $0x98] sm:$0xff] %v159_v19  ;;  %v199_v59 = vld [vmem:[%s776_s24 + $0x1d8] sm:$0xff]  ;;  %v200_v60 = vld [vmem:[%s776_s24 + $0x1e0] sm:$0xff]  ;;  %v201_v61 = vld [vmem:[%s776_s24 + $0x1e8] sm:$0xff] }
  0x40   : > { %304 = vst [vmem:[%s785_s22 + $0xa0] sm:$0xff] %v160_v20  ;;  %v202_v62 = vld [vmem:[%s776_s24 + $0x1f0] sm:$0xff]  ;;  %v203_v63 = vld [vmem:[%s776_s24 + $0x1f8] sm:$0xff]  ;;  %v204_v0 = vld [vmem:[%s776_s24 + $0x200] sm:$0xff] }
  0x41   : > { %305 = vst [vmem:[%s785_s22 + $0xa8] sm:$0xff] %v161_v21  ;;  %v205_v1 = vld [vmem:[%s776_s24 + $0x208] sm:$0xff]  ;;  %v206_v2 = vld [vmem:[%s776_s24 + $0x210] sm:$0xff]  ;;  %v207_v3 = vld [vmem:[%s776_s24 + $0x218] sm:$0xff] }
  0x42   : > { %306 = vst [vmem:[%s785_s22 + $0xb0] sm:$0xff] %v162_v22  ;;  %v208_v4 = vld [vmem:[%s776_s24 + $0x220] sm:$0xff]  ;;  %v209_v5 = vld [vmem:[%s776_s24 + $0x228] sm:$0xff]  ;;  %v210_v6 = vld [vmem:[%s776_s24 + $0x230] sm:$0xff] }
  0x43   : > { %307 = vst [vmem:[%s785_s22 + $0xb8] sm:$0xff] %v163_v23  ;;  %v211_v7 = vld [vmem:[%s776_s24 + $0x238] sm:$0xff]  ;;  %v212_v8 = vld [vmem:[%s776_s24 + $0x240] sm:$0xff]  ;;  %v213_v9 = vld [vmem:[%s776_s24 + $0x248] sm:$0xff] }
  0x44   : > { %308 = vst [vmem:[%s785_s22 + $0xc0] sm:$0xff] %v164_v24  ;;  %v214_v10 = vld [vmem:[%s776_s24 + $0x250] sm:$0xff]  ;;  %v215_v11 = vld [vmem:[%s776_s24 + $0x258] sm:$0xff]  ;;  %v216_v12 = vld [vmem:[%s776_s24 + $0x260] sm:$0xff] }
  0x45   : > { %309 = vst [vmem:[%s785_s22 + $0xc8] sm:$0xff] %v165_v25  ;;  %v217_v13 = vld [vmem:[%s776_s24 + $0x268] sm:$0xff]  ;;  %v218_v14 = vld [vmem:[%s776_s24 + $0x270] sm:$0xff]  ;;  %v219_v15 = vld [vmem:[%s776_s24 + $0x278] sm:$0xff] }
  0x46   : > { %310 = vst [vmem:[%s785_s22 + $0xd0] sm:$0xff] %v166_v26  ;;  %v220_v16 = vld [vmem:[%s776_s24 + $0x280] sm:$0xff]  ;;  %v221_v17 = vld [vmem:[%s776_s24 + $0x288] sm:$0xff]  ;;  %v222_v18 = vld [vmem:[%s776_s24 + $0x290] sm:$0xff] }
  0x47   : > { %311 = vst [vmem:[%s785_s22 + $0xd8] sm:$0xff] %v167_v27  ;;  %v223_v19 = vld [vmem:[%s776_s24 + $0x298] sm:$0xff]  ;;  %v224_v20 = vld [vmem:[%s776_s24 + $0x2a0] sm:$0xff]  ;;  %v225_v21 = vld [vmem:[%s776_s24 + $0x2a8] sm:$0xff] }
  0x48   : > { %312 = vst [vmem:[%s785_s22 + $0xe0] sm:$0xff] %v168_v28  ;;  %v226_v22 = vld [vmem:[%s776_s24 + $0x2b0] sm:$0xff]  ;;  %v227_v23 = vld [vmem:[%s776_s24 + $0x2b8] sm:$0xff]  ;;  %v228_v24 = vld [vmem:[%s776_s24 + $0x2c0] sm:$0xff] }
  0x49   : > { %313 = vst [vmem:[%s785_s22 + $0xe8] sm:$0xff] %v169_v29  ;;  %v229_v25 = vld [vmem:[%s776_s24 + $0x2c8] sm:$0xff]  ;;  %v230_v26 = vld [vmem:[%s776_s24 + $0x2d0] sm:$0xff]  ;;  %v231_v27 = vld [vmem:[%s776_s24 + $0x2d8] sm:$0xff] }
  0x4a   : > { %314 = vst [vmem:[%s785_s22 + $0xf0] sm:$0xff] %v170_v30  ;;  %v232_v28 = vld [vmem:[%s776_s24 + $0x2e0] sm:$0xff]  ;;  %v233_v29 = vld [vmem:[%s776_s24 + $0x2e8] sm:$0xff]  ;;  %v234_v30 = vld [vmem:[%s776_s24 + $0x2f0] sm:$0xff] }
  0x4b   : > { %315 = vst [vmem:[%s785_s22 + $0xf8] sm:$0xff] %v171_v31  ;;  %v235_v31 = vld [vmem:[%s776_s24 + $0x2f8] sm:$0xff] }
  0x4c   : > { %316 = vst [vmem:[%s785_s22 + $0x100] sm:$0xff] %v172_v32  ;;  %v236_v32 = vld [vmem:[%s776_s24 + $0x300] sm:$0xff] }
  0x4d   : > { %317 = vst [vmem:[%s785_s22 + $0x108] sm:$0xff] %v173_v33  ;;  %v237_v33 = vld [vmem:[%s776_s24 + $0x308] sm:$0xff] }
  0x4e   : > { %318 = vst [vmem:[%s785_s22 + $0x110] sm:$0xff] %v174_v34  ;;  %v238_v34 = vld [vmem:[%s776_s24 + $0x310] sm:$0xff] }
  0x4f   : > { %319 = vst [vmem:[%s785_s22 + $0x118] sm:$0xff] %v175_v35  ;;  %v239_v35 = vld [vmem:[%s776_s24 + $0x318] sm:$0xff] }
  0x50   : > { %320 = vst [vmem:[%s785_s22 + $0x120] sm:$0xff] %v176_v36  ;;  %v240_v36 = vld [vmem:[%s776_s24 + $0x320] sm:$0xff] }
  0x51   : > { %321 = vst [vmem:[%s785_s22 + $0x128] sm:$0xff] %v177_v37  ;;  %v241_v37 = vld [vmem:[%s776_s24 + $0x328] sm:$0xff] }
  0x52   : > { %322 = vst [vmem:[%s785_s22 + $0x130] sm:$0xff] %v178_v38  ;;  %v242_v38 = vld [vmem:[%s776_s24 + $0x330] sm:$0xff] }
  0x53   : > { %323 = vst [vmem:[%s785_s22 + $0x138] sm:$0xff] %v179_v39  ;;  %v243_v39 = vld [vmem:[%s776_s24 + $0x338] sm:$0xff] }
  0x54   : > { %324 = vst [vmem:[%s785_s22 + $0x140] sm:$0xff] %v180_v40  ;;  %v244_v40 = vld [vmem:[%s776_s24 + $0x340] sm:$0xff] }
  0x55   : > { %325 = vst [vmem:[%s785_s22 + $0x148] sm:$0xff] %v181_v41  ;;  %v245_v41 = vld [vmem:[%s776_s24 + $0x348] sm:$0xff] }
  0x56   : > { %326 = vst [vmem:[%s785_s22 + $0x150] sm:$0xff] %v182_v42  ;;  %v246_v42 = vld [vmem:[%s776_s24 + $0x350] sm:$0xff] }
  0x57   : > { %327 = vst [vmem:[%s785_s22 + $0x158] sm:$0xff] %v183_v43  ;;  %v247_v43 = vld [vmem:[%s776_s24 + $0x358] sm:$0xff] }
  0x58   : > { %328 = vst [vmem:[%s785_s22 + $0x160] sm:$0xff] %v184_v44  ;;  %v248_v44 = vld [vmem:[%s776_s24 + $0x360] sm:$0xff] }
  0x59   : > { %329 = vst [vmem:[%s785_s22 + $0x168] sm:$0xff] %v185_v45  ;;  %v249_v45 = vld [vmem:[%s776_s24 + $0x368] sm:$0xff] }
  0x5a   : > { %330 = vst [vmem:[%s785_s22 + $0x170] sm:$0xff] %v186_v46  ;;  %v250_v46 = vld [vmem:[%s776_s24 + $0x370] sm:$0xff] }
  0x5b   : > { %331 = vst [vmem:[%s785_s22 + $0x178] sm:$0xff] %v187_v47  ;;  %v251_v47 = vld [vmem:[%s776_s24 + $0x378] sm:$0xff] }
  0x5c   : > { %332 = vst [vmem:[%s785_s22 + $0x180] sm:$0xff] %v188_v48  ;;  %v252_v48 = vld [vmem:[%s776_s24 + $0x380] sm:$0xff] }
  0x5d   : > { %333 = vst [vmem:[%s785_s22 + $0x188] sm:$0xff] %v189_v49  ;;  %v253_v49 = vld [vmem:[%s776_s24 + $0x388] sm:$0xff] }
  0x5e   : > { %334 = vst [vmem:[%s785_s22 + $0x190] sm:$0xff] %v190_v50  ;;  %v254_v50 = vld [vmem:[%s776_s24 + $0x390] sm:$0xff] }
  0x5f   : > { %335 = vst [vmem:[%s785_s22 + $0x198] sm:$0xff] %v191_v51  ;;  %v255_v51 = vld [vmem:[%s776_s24 + $0x398] sm:$0xff] }
  0x60   : > { %336 = vst [vmem:[%s785_s22 + $0x1a0] sm:$0xff] %v192_v52  ;;  %v256_v52 = vld [vmem:[%s776_s24 + $0x3a0] sm:$0xff] }
  0x61   : > { %337 = vst [vmem:[%s785_s22 + $0x1a8] sm:$0xff] %v193_v53  ;;  %v257_v53 = vld [vmem:[%s776_s24 + $0x3a8] sm:$0xff] }
  0x62   : > { %338 = vst [vmem:[%s785_s22 + $0x1b0] sm:$0xff] %v194_v54  ;;  %v258_v54 = vld [vmem:[%s776_s24 + $0x3b0] sm:$0xff] }
  0x63   : > { %339 = vst [vmem:[%s785_s22 + $0x1b8] sm:$0xff] %v195_v55  ;;  %v259_v55 = vld [vmem:[%s776_s24 + $0x3b8] sm:$0xff] }
  0x64   : > { %340 = vst [vmem:[%s785_s22 + $0x1c0] sm:$0xff] %v196_v56  ;;  %v260_v56 = vld [vmem:[%s776_s24 + $0x3c0] sm:$0xff] }
  0x65   : > { %341 = vst [vmem:[%s785_s22 + $0x1c8] sm:$0xff] %v197_v57  ;;  %v261_v57 = vld [vmem:[%s776_s24 + $0x3c8] sm:$0xff] }
  0x66   : > { %342 = vst [vmem:[%s785_s22 + $0x1d0] sm:$0xff] %v198_v58  ;;  %v262_v58 = vld [vmem:[%s776_s24 + $0x3d0] sm:$0xff] }
  0x67   : > { %343 = vst [vmem:[%s785_s22 + $0x1d8] sm:$0xff] %v199_v59  ;;  %v263_v59 = vld [vmem:[%s776_s24 + $0x3d8] sm:$0xff] }
  0x68   : > { %344 = vst [vmem:[%s785_s22 + $0x1e0] sm:$0xff] %v200_v60  ;;  %v264_v60 = vld [vmem:[%s776_s24 + $0x3e0] sm:$0xff] }
  0x69   : > { %345 = vst [vmem:[%s785_s22 + $0x1e8] sm:$0xff] %v201_v61  ;;  %v265_v61 = vld [vmem:[%s776_s24 + $0x3e8] sm:$0xff] }
  0x6a   : > { %346 = vst [vmem:[%s785_s22 + $0x1f0] sm:$0xff] %v202_v62  ;;  %v266_v62 = vld [vmem:[%s776_s24 + $0x3f0] sm:$0xff] }
  0x6b   : > { %347 = vst [vmem:[%s785_s22 + $0x1f8] sm:$0xff] %v203_v63  ;;  %v267_v63 = vld [vmem:[%s776_s24 + $0x3f8] sm:$0xff] }
  0x6c   : > { %348 = vst [vmem:[%s785_s22 + $0x200] sm:$0xff] %v204_v0  ;;  %v268_v0 = vld [vmem:[%s776_s24 + $0x400] sm:$0xff] }
  0x6d   : > { %349 = vst [vmem:[%s785_s22 + $0x208] sm:$0xff] %v205_v1  ;;  %v269_v1 = vld [vmem:[%s776_s24 + $0x408] sm:$0xff] }
  0x6e   : > { %350 = vst [vmem:[%s785_s22 + $0x210] sm:$0xff] %v206_v2  ;;  %v270_v2 = vld [vmem:[%s776_s24 + $0x410] sm:$0xff] }
  0x6f   : > { %351 = vst [vmem:[%s785_s22 + $0x218] sm:$0xff] %v207_v3  ;;  %v271_v3 = vld [vmem:[%s776_s24 + $0x418] sm:$0xff] }
  0x70   : > { %352 = vst [vmem:[%s785_s22 + $0x220] sm:$0xff] %v208_v4  ;;  %v272_v4 = vld [vmem:[%s776_s24 + $0x420] sm:$0xff] }
  0x71   : > { %353 = vst [vmem:[%s785_s22 + $0x228] sm:$0xff] %v209_v5  ;;  %v273_v5 = vld [vmem:[%s776_s24 + $0x428] sm:$0xff] }
  0x72   : > { %354 = vst [vmem:[%s785_s22 + $0x230] sm:$0xff] %v210_v6  ;;  %v274_v6 = vld [vmem:[%s776_s24 + $0x430] sm:$0xff] }
  0x73   : > { %355 = vst [vmem:[%s785_s22 + $0x238] sm:$0xff] %v211_v7  ;;  %v275_v7 = vld [vmem:[%s776_s24 + $0x438] sm:$0xff] }
  0x74   : > { %356 = vst [vmem:[%s785_s22 + $0x240] sm:$0xff] %v212_v8  ;;  %v276_v8 = vld [vmem:[%s776_s24 + $0x440] sm:$0xff] }
  0x75   : > { %357 = vst [vmem:[%s785_s22 + $0x248] sm:$0xff] %v213_v9  ;;  %v277_v9 = vld [vmem:[%s776_s24 + $0x448] sm:$0xff] }
  0x76   : > { %358 = vst [vmem:[%s785_s22 + $0x250] sm:$0xff] %v214_v10  ;;  %v278_v10 = vld [vmem:[%s776_s24 + $0x450] sm:$0xff] }
  0x77   : > { %359 = vst [vmem:[%s785_s22 + $0x258] sm:$0xff] %v215_v11  ;;  %v279_v11 = vld [vmem:[%s776_s24 + $0x458] sm:$0xff] }
  0x78   : > { %360 = vst [vmem:[%s785_s22 + $0x260] sm:$0xff] %v216_v12  ;;  %v280_v12 = vld [vmem:[%s776_s24 + $0x460] sm:$0xff] }
  0x79   : > { %361 = vst [vmem:[%s785_s22 + $0x268] sm:$0xff] %v217_v13  ;;  %v281_v13 = vld [vmem:[%s776_s24 + $0x468] sm:$0xff] }
  0x7a   : > { %362 = vst [vmem:[%s785_s22 + $0x270] sm:$0xff] %v218_v14  ;;  %v282_v14 = vld [vmem:[%s776_s24 + $0x470] sm:$0xff] }
  0x7b   : > { %363 = vst [vmem:[%s785_s22 + $0x278] sm:$0xff] %v219_v15  ;;  %v283_v15 = vld [vmem:[%s776_s24 + $0x478] sm:$0xff] }
  0x7c   : > { %364 = vst [vmem:[%s785_s22 + $0x280] sm:$0xff] %v220_v16 }
  0x7d   : > { %365 = vst [vmem:[%s785_s22 + $0x288] sm:$0xff] %v221_v17 }
  0x7e   : > { %366 = vst [vmem:[%s785_s22 + $0x290] sm:$0xff] %v222_v18 }
  0x7f   : > { %367 = vst [vmem:[%s785_s22 + $0x298] sm:$0xff] %v223_v19 }
  0x80   : > { %368 = vst [vmem:[%s785_s22 + $0x2a0] sm:$0xff] %v224_v20 }
  0x81   : > { %369 = vst [vmem:[%s785_s22 + $0x2a8] sm:$0xff] %v225_v21 }
  0x82   : > { %370 = vst [vmem:[%s785_s22 + $0x2b0] sm:$0xff] %v226_v22 }
  0x83   : > { %371 = vst [vmem:[%s785_s22 + $0x2b8] sm:$0xff] %v227_v23 }
  0x84   : > { %372 = vst [vmem:[%s785_s22 + $0x2c0] sm:$0xff] %v228_v24 }
  0x85   : > { %373 = vst [vmem:[%s785_s22 + $0x2c8] sm:$0xff] %v229_v25 }
  0x86   : > { %374 = vst [vmem:[%s785_s22 + $0x2d0] sm:$0xff] %v230_v26 }
  0x87   : > { %375 = vst [vmem:[%s785_s22 + $0x2d8] sm:$0xff] %v231_v27 }
  0x88   : > { %376 = vst [vmem:[%s785_s22 + $0x2e0] sm:$0xff] %v232_v28 }
  0x89   : > { %377 = vst [vmem:[%s785_s22 + $0x2e8] sm:$0xff] %v233_v29 }
  0x8a   : > { %378 = vst [vmem:[%s785_s22 + $0x2f0] sm:$0xff] %v234_v30 }
  0x8b   : > { %379 = vst [vmem:[%s785_s22 + $0x2f8] sm:$0xff] %v235_v31 }
  0x8c   : > { %380 = vst [vmem:[%s785_s22 + $0x300] sm:$0xff] %v236_v32 }
  0x8d   : > { %381 = vst [vmem:[%s785_s22 + $0x308] sm:$0xff] %v237_v33 }
  0x8e   : > { %382 = vst [vmem:[%s785_s22 + $0x310] sm:$0xff] %v238_v34 }
  0x8f   : > { %383 = vst [vmem:[%s785_s22 + $0x318] sm:$0xff] %v239_v35 }
  0x90   : > { %384 = vst [vmem:[%s785_s22 + $0x320] sm:$0xff] %v240_v36 }
  0x91   : > { %385 = vst [vmem:[%s785_s22 + $0x328] sm:$0xff] %v241_v37 }
  0x92   : > { %386 = vst [vmem:[%s785_s22 + $0x330] sm:$0xff] %v242_v38 }
  0x93   : > { %387 = vst [vmem:[%s785_s22 + $0x338] sm:$0xff] %v243_v39 }
  0x94   : > { %388 = vst [vmem:[%s785_s22 + $0x340] sm:$0xff] %v244_v40 }
  0x95   : > { %389 = vst [vmem:[%s785_s22 + $0x348] sm:$0xff] %v245_v41 }
  0x96   : > { %390 = vst [vmem:[%s785_s22 + $0x350] sm:$0xff] %v246_v42 }
  0x97   : > { %391 = vst [vmem:[%s785_s22 + $0x358] sm:$0xff] %v247_v43 }
  0x98   : > { %392 = vst [vmem:[%s785_s22 + $0x360] sm:$0xff] %v248_v44 }
  0x99   : > { %393 = vst [vmem:[%s785_s22 + $0x368] sm:$0xff] %v249_v45 }
  0x9a   : > { %394 = vst [vmem:[%s785_s22 + $0x370] sm:$0xff] %v250_v46 }
  0x9b   : > { %395 = vst [vmem:[%s785_s22 + $0x378] sm:$0xff] %v251_v47 }
  0x9c   : > { %396 = vst [vmem:[%s785_s22 + $0x380] sm:$0xff] %v252_v48 }
  0x9d   : > { %397 = vst [vmem:[%s785_s22 + $0x388] sm:$0xff] %v253_v49 }
  0x9e   : > { %398 = vst [vmem:[%s785_s22 + $0x390] sm:$0xff] %v254_v50 }
  0x9f   : > { %399 = vst [vmem:[%s785_s22 + $0x398] sm:$0xff] %v255_v51 }
  0xa0   : > { %400 = vst [vmem:[%s785_s22 + $0x3a0] sm:$0xff] %v256_v52 }
  0xa1   : > { %401 = vst [vmem:[%s785_s22 + $0x3a8] sm:$0xff] %v257_v53 }
  0xa2   : > { %402 = vst [vmem:[%s785_s22 + $0x3b0] sm:$0xff] %v258_v54 }
  0xa3   : > { %403 = vst [vmem:[%s785_s22 + $0x3b8] sm:$0xff] %v259_v55 }
  0xa4   : > { %404 = vst [vmem:[%s785_s22 + $0x3c0] sm:$0xff] %v260_v56 }
  0xa5   : > { %405 = vst [vmem:[%s785_s22 + $0x3c8] sm:$0xff] %v261_v57 }
  0xa6   : > { %406 = vst [vmem:[%s785_s22 + $0x3d0] sm:$0xff] %v262_v58 }
  0xa7   : > { %407 = vst [vmem:[%s785_s22 + $0x3d8] sm:$0xff] %v263_v59 }
  0xa8   : > { %408 = vst [vmem:[%s785_s22 + $0x3e0] sm:$0xff] %v264_v60 }
  0xa9   : > { %409 = vst [vmem:[%s785_s22 + $0x3e8] sm:$0xff] %v265_v61 }
  0xaa   : > { %410 = vst [vmem:[%s785_s22 + $0x3f0] sm:$0xff] %v266_v62 }
  0xab   : > { %411 = vst [vmem:[%s785_s22 + $0x3f8] sm:$0xff] %v267_v63 }
  0xac   : > { %412 = vst [vmem:[%s785_s22 + $0x400] sm:$0xff] %v268_v0 }
  0xad   : > { %413 = vst [vmem:[%s785_s22 + $0x408] sm:$0xff] %v269_v1 }
  0xae   : > { %414 = vst [vmem:[%s785_s22 + $0x410] sm:$0xff] %v270_v2 }
  0xaf   : > { %415 = vst [vmem:[%s785_s22 + $0x418] sm:$0xff] %v271_v3 }
  0xb0   : > { %416 = vst [vmem:[%s785_s22 + $0x420] sm:$0xff] %v272_v4 }
  0xb1   : > { %417 = vst [vmem:[%s785_s22 + $0x428] sm:$0xff] %v273_v5 }
  0xb2   : > { %418 = vst [vmem:[%s785_s22 + $0x430] sm:$0xff] %v274_v6 }
  0xb3   : > { %419 = vst [vmem:[%s785_s22 + $0x438] sm:$0xff] %v275_v7 }
  0xb4   : > { %420 = vst [vmem:[%s785_s22 + $0x440] sm:$0xff] %v276_v8 }
  0xb5   : > { %421 = vst [vmem:[%s785_s22 + $0x448] sm:$0xff] %v277_v9 }
  0xb6   : > { %422 = vst [vmem:[%s785_s22 + $0x450] sm:$0xff] %v278_v10 }
  0xb7   : > { %423 = vst [vmem:[%s785_s22 + $0x458] sm:$0xff] %v279_v11 }
  0xb8   : > { %424 = vst [vmem:[%s785_s22 + $0x460] sm:$0xff] %v280_v12 }
  0xb9   : > { %425 = vst [vmem:[%s785_s22 + $0x468] sm:$0xff] %v281_v13 }
  0xba   : > { %426 = vst [vmem:[%s785_s22 + $0x470] sm:$0xff] %v282_v14 }
  0xbb   : > { %427 = vst [vmem:[%s785_s22 + $0x478] sm:$0xff] %v283_v15 }
  0xbc   : > { %639 = shalt.err (!%p636_p7)
}
  0xbd   : > { %s682_s14 = smov 768   ;;  %s683_s19 = smov 48  }
  0xbe   : > { %532 = dma.vmem_to_hbm [thread:$0]  (%p740_p11), %s443_s10, 18432, %s445_s28, %s429_s29, %s682_s14, %s682_s14, %s683_s19  }
  0xbf PF: > { %s459_s20 = sand.u32 1, %s666_s6   ;;  %p539_p8 = pnand %p520_p9, %p744_p12 }
  0xc0   : > { %s460_s21 = scalar_lea.sflag [#allocation4], %s459_s20 }
  0xc1   : > { %p540_p10 = pneg %p539_p8 }
  0xc3   : > { %661 = dma.done.wait (%p540_p10), %s460_s21, 18432  }
  0xc4   : > { %663 = vsyncadd (%p540_p10), %s460_s21, 4294948864  ;;  %p14_p1 = scmp.ge.s32.totalorder %s719_s12, 4   ;;  %s1112_s6 = smov %s670_s7 }
  0xc5   : > { %s1113_s7 = smov %s674_s8  ;;  %s1114_s8 = smov %s731_s15 }
  0xc6   : > { %s1115_s9 = smov %s719_s12  ;;  %16 = sbr.rel (!%p14_p1) target bundleno = 5 (0x5), region = 69 }
  0xcb   :  { %466 = vsyncpa [#allocation3], 1 }
  0xcc   :  { %468 = vsyncpa [#allocation3 + $0x1], 1 }
  0xcd   :  { %469 = vsyncpa [#allocation4], 1 }
  0xce   :  { %471 = vsyncpa [#allocation4 + $0x1], 1 }

</bundles_post_ra>
